<compile_context>
chip_gen: v6e
topology: v6e:2x2x1
jax: 0.10.0
libtpu: 0.0.40
codegen_flags: <defaults>
</compile_context>

<pallas_src>
import jax
import jax.numpy as jnp
from jax.experimental import pallas as pl
from jax.experimental.pallas import tpu as pltpu

HIDDEN = 253          # matches nn.Linear(1, 253)
HIDDEN_PAD = 256      # 2 full lane vregs; padded entries stay zero
LANES = 128           # vreg lane width (MXU RHS width)
CHUNK = 128           # batch rows per inner-loop iteration (bounds vreg pressure)
MAX_TILE_B = 2048     # batch rows per grid step (multiple of CHUNK)


def mlp_kernel(x_ref, w1_ref, b1_ref, w2_ref, b2_ref, o_ref):
    # x_ref: (tile_b, 1)   batch on sublanes
    # w1_ref/b1_ref: (1, HIDDEN_PAD) resident in VMEM
    # w2_ref: (HIDDEN_PAD, LANES) resident in VMEM (only lane 0 non-zero)
    # b2_ref: (1,) scalar in SMEM
    # o_ref: (tile_b, 1)
    w1 = w1_ref[...]          # (1, HP) -- hoisted out of the chunk loop
    b1 = b1_ref[...]          # (1, HP)
    b2 = b2_ref[0]            # scalar
    n_chunks = x_ref.shape[0] // CHUNK

    @pl.loop(0, n_chunks)
    def _(c):
        r = pl.multiple_of(c * CHUNK, CHUNK)
        xc = x_ref[pl.ds(r, CHUNK), :]                     # (CHUNK, 1)
        # Layer 1 on the VPU: lane-broadcast xc, sublane-broadcast w1/b1.
        h = jnp.maximum(xc * w1 + b1, 0.0)                 # (CHUNK, HP)
        # Layer 2 on the MXU: resident (HP, 128) RHS, only column 0 non-zero.
        y = jnp.dot(h, w2_ref[...],
                    preferred_element_type=jnp.float32)    # (CHUNK, 128)
        o_ref[pl.ds(r, CHUNK), :] = y[:, :1] + b2          # (CHUNK, 1) store


def nn_shallow_forward(x, w1, b1, w2, b2, *, tile_b=None):
    """Forward pass of NN_Shallow.

    x : (B, 1) float32.
    Weights stored transposed w.r.t. PyTorch:
      w1: (1, HIDDEN), b1: (1, HIDDEN), w2: (HIDDEN, 1), b2: (1, 1).
    """
    B = x.shape[0]
    H = w1.shape[1]

    if tile_b is None:
        # Aim for >= 2 tiles on mid/large batches so both v7x TensorCores get
        # work; cap the tile so double-buffered x/out stay around 1 MiB each.
        tile_b = min(MAX_TILE_B, max(CHUNK, pl.cdiv(B, 2 * CHUNK) * CHUNK))
    tile_b = int(pl.cdiv(tile_b, CHUNK) * CHUNK)
    n_tiles = int(pl.cdiv(B, tile_b))
    b_pad = n_tiles * tile_b

    x_col = x.reshape(B, 1).astype(jnp.float32)
    if b_pad != B:
        # Only the ragged tail is padded; padded rows are sliced off below.
        x_col = jnp.pad(x_col, ((0, b_pad - B), (0, 0)))

    # Hidden padded 253 -> 256: padded b1 entries are 0 (ReLU keeps those
    # units at 0) and padded w2 rows are 0, so padding contributes nothing.
    w1p = jnp.zeros((1, HIDDEN_PAD), jnp.float32).at[0, :H].set(
        w1.reshape(-1).astype(jnp.float32))
    b1p = jnp.zeros((1, HIDDEN_PAD), jnp.float32).at[0, :H].set(
        b1.reshape(-1).astype(jnp.float32))
    w2p = jnp.zeros((HIDDEN_PAD, LANES), jnp.float32).at[:H, 0].set(
        w2.reshape(-1).astype(jnp.float32))
    b2s = b2.reshape(1).astype(jnp.float32)

    out = pl.pallas_call(
        mlp_kernel,
        out_shape=jax.ShapeDtypeStruct((b_pad, 1), jnp.float32),
        grid=(n_tiles,),
        in_specs=[
            pl.BlockSpec((tile_b, 1), lambda i: (i, 0)),           # x tile
            pl.BlockSpec((1, HIDDEN_PAD), lambda i: (0, 0)),       # resident w1
            pl.BlockSpec((1, HIDDEN_PAD), lambda i: (0, 0)),       # resident b1
            pl.BlockSpec((HIDDEN_PAD, LANES), lambda i: (0, 0)),   # resident w2
            pl.BlockSpec(memory_space=pltpu.MemorySpace.SMEM),     # scalar b2
        ],
        out_specs=pl.BlockSpec((tile_b, 1), lambda i: (i, 0)),
        compiler_params=pltpu.CompilerParams(
            dimension_semantics=("parallel",),
        ),
    )(x_col, w1p, b1p, w2p, b2s)

    return out[:B]


def init_params(key):
    # Deterministic init mimicking PyTorch's default Linear init
    # (uniform in +-1/sqrt(fan_in)).
    k1, k2, k3, k4 = jax.random.split(key, 4)
    bound1 = 1.0 / jnp.sqrt(1.0)     # fan_in = 1
    bound2 = 1.0 / jnp.sqrt(253.0)   # fan_in = 253
    w1 = jax.random.uniform(k1, (1, HIDDEN), jnp.float32, -bound1, bound1)
    b1 = jax.random.uniform(k2, (1, HIDDEN), jnp.float32, -bound1, bound1)
    w2 = jax.random.uniform(k3, (HIDDEN, 1), jnp.float32, -bound2, bound2)
    b2 = jax.random.uniform(k4, (1, 1), jnp.float32, -bound2, bound2)
    return w1, b1, w2, b2


def reference_forward(x, w1, b1, w2, b2):
    h = jnp.maximum(x @ w1 + b1, 0.0)
    return h @ w2 + b2


if __name__ == "__main__":
    key = jax.random.PRNGKey(0)
    kx, kp = jax.random.split(key)

    batch = 8   # small demo size; perf wins appear at large batch
    x = jax.random.normal(kx, (batch, 1), jnp.float32)   # (B, 1) like PyTorch
    w1, b1, w2, b2 = init_params(kp)

    out = nn_shallow_forward(x, w1, b1, w2, b2)
    out = jax.block_until_ready(out)

    ref = reference_forward(x, w1, b1, w2, b2)
    assert out.shape == (batch, 1)
    assert jnp.allclose(out, ref, atol=1e-4, rtol=1e-4), float(
        jnp.max(jnp.abs(out - ref)))

    print("KERNEL_OK")
</pallas_src>

<mosaic_0001>
module attributes {stable_mosaic.version = 11 : i64} {
  func.func @mlp_kernel(%arg0: i32, %arg1: memref<128x1xf32, #tpu.memory_space<vmem>>, %arg2: memref<1x256xf32, #tpu.memory_space<vmem>>, %arg3: memref<1x256xf32, #tpu.memory_space<vmem>>, %arg4: memref<256x128xf32, #tpu.memory_space<vmem>>, %arg5: memref<1xf32, #tpu.memory_space<smem>>, %arg6: memref<128x1xf32, #tpu.memory_space<vmem>>) attributes {dimension_semantics = [#tpu.dimension_semantics<parallel>], iteration_bounds = array<i64: 1>, scalar_prefetch = 0 : i64, scratch_operands = 0 : i64, tpu.core_type = #tpu.core_type<tc>, window_params = [{transform_indices = @transform_0, window_bounds = array<i64: 128, 1>}, {pipeline_mode = #tpu.pipeline_mode<synchronous>, transform_indices = @transform_1, window_bounds = array<i64: 1, 256>}, {pipeline_mode = #tpu.pipeline_mode<synchronous>, transform_indices = @transform_2, window_bounds = array<i64: 1, 256>}, {pipeline_mode = #tpu.pipeline_mode<synchronous>, transform_indices = @transform_3, window_bounds = array<i64: 256, 128>}, {transform_indices = @transform_4, window_bounds = array<i64: 1>}, {transform_indices = @transform_5, window_bounds = array<i64: 128, 1>}]} {
    %c0 = arith.constant 0 : index
    %c0_0 = arith.constant 0 : index
    %0 = vector.load %arg2[%c0, %c0_0] : memref<1x256xf32, #tpu.memory_space<vmem>>, vector<1x256xf32>
    %c0_1 = arith.constant 0 : index
    %c0_2 = arith.constant 0 : index
    %1 = vector.load %arg3[%c0_1, %c0_2] : memref<1x256xf32, #tpu.memory_space<vmem>>, vector<1x256xf32>
    %c0_3 = arith.constant 0 : index
    %2 = memref.load %arg5[%c0_3] : memref<1xf32, #tpu.memory_space<smem>>
    %c0_i32 = arith.constant 0 : i32
    %c1_i32 = arith.constant 1 : i32
    %3 = arith.muli %c0_i32, %c1_i32 : i32
    %c0_i32_4 = arith.constant 0 : i32
    %4 = arith.addi %c0_i32_4, %3 : i32
    %c128_i32 = arith.constant 128 : i32
    %5 = arith.muli %4, %c128_i32 : i32
    %6 = tpu.assume_multiple %5, 128 : i32
    %7 = arith.index_cast %6 : i32 to index
    %c0_5 = arith.constant 0 : index
    %8 = vector.load %arg1[%7, %c0_5] : memref<128x1xf32, #tpu.memory_space<vmem>>, vector<128x1xf32>
    %9 = vector.broadcast %8 : vector<128x1xf32> to vector<128x256xf32>
    %10 = vector.broadcast %0 : vector<1x256xf32> to vector<128x256xf32>
    %11 = arith.mulf %9, %10 : vector<128x256xf32>
    %12 = vector.broadcast %1 : vector<1x256xf32> to vector<128x256xf32>
    %13 = arith.addf %11, %12 : vector<128x256xf32>
    %cst = arith.constant 0.000000e+00 : f32
    %14 = vector.broadcast %cst : f32 to vector<128x256xf32>
    %15 = arith.maximumf %13, %14 : vector<128x256xf32>
    %c0_6 = arith.constant 0 : index
    %c0_7 = arith.constant 0 : index
    %16 = vector.load %arg4[%c0_6, %c0_7] : memref<256x128xf32, #tpu.memory_space<vmem>>, vector<256x128xf32>
    %cst_8 = arith.constant dense<0.000000e+00> : vector<128x128xf32>
    %17 = tpu.matmul %15, %16, %cst_8 {dimension_numbers = #tpu.dot_dimension_numbers<[1], [0], [0], [1], [0, 0, 1, 1], [], []>} : vector<128x256xf32>, vector<256x128xf32>, vector<128x128xf32> -> vector<128x128xf32>
    %18 = vector.extract_strided_slice %17 {offsets = [0, 0], sizes = [128, 1], strides = [1, 1]} : vector<128x128xf32> to vector<128x1xf32>
    %19 = vector.broadcast %2 : f32 to vector<128x1xf32>
    %20 = arith.addf %18, %19 : vector<128x1xf32>
    %21 = arith.index_cast %6 : i32 to index
    %c0_9 = arith.constant 0 : index
    %22 = vector.load %arg6[%21, %c0_9] : memref<128x1xf32, #tpu.memory_space<vmem>>, vector<128x1xf32>
    tpu.vector_store %arg6[%21, %c0_9], %20 {strides = array<i32>} : memref<128x1xf32, #tpu.memory_space<vmem>>, vector<128x1xf32>,
    %c1_i32_10 = arith.constant 1 : i32
    return
  }
  func.func @transform_0(%arg0: i32) -> (i32, i32) {
    %c0_i32 = arith.constant 0 : i32
    %c0_i32_0 = arith.constant 0 : i32
    return %arg0, %c0_i32 : i32, i32
  }
  func.func @transform_1(%arg0: i32) -> (i32, i32) {
    %c0_i32 = arith.constant 0 : i32
    %c0_i32_0 = arith.constant 0 : i32
    %c0_i32_1 = arith.constant 0 : i32
    return %c0_i32, %c0_i32_0 : i32, i32
  }
  func.func @transform_2(%arg0: i32) -> (i32, i32) {
    %c0_i32 = arith.constant 0 : i32
    %c0_i32_0 = arith.constant 0 : i32
    %c0_i32_1 = arith.constant 0 : i32
    return %c0_i32, %c0_i32_0 : i32, i32
  }
  func.func @transform_3(%arg0: i32) -> (i32, i32) {
    %c0_i32 = arith.constant 0 : i32
    %c0_i32_0 = arith.constant 0 : i32
    %c0_i32_1 = arith.constant 0 : i32
    return %c0_i32, %c0_i32_0 : i32, i32
  }
  func.func @transform_4(%arg0: i32) -> i32 {
    %c0_i32 = arith.constant 0 : i32
    %c0_i32_0 = arith.constant 0 : i32
    return %c0_i32 : i32
  }
  func.func @transform_5(%arg0: i32) -> (i32, i32) {
    %c0_i32 = arith.constant 0 : i32
    %c0_i32_0 = arith.constant 0 : i32
    return %arg0, %c0_i32 : i32, i32
  }
}

</mosaic_0001>

<bundles_post_ra>
// kernel: tpu_custom_call.1
= control target key start
LH: loop header
LB: loop body
LE: loop exit
PB: predicated region body
PF: predicated region fallthrough
CT: control target
= control target key end

     0   :  { %11 = vsyncpa [#allocation4], 0  ;;  %s608_s18 = smov [#allocation3]   ;;  %s856_s0 = inlined_call_operand.vmem [shape: f32[128,1], index: 0, kind: input, shape index: {}]   ;;  %s857_s1 = inlined_call_operand.vmem [shape: f32[1,256], index: 1, kind: input, shape index: {}]   ;;  %s858_s2 = inlined_call_operand.vmem [shape: f32[1,256], index: 2, kind: input, shape index: {}]   ;;  %s859_s3 = inlined_call_operand.hbm [shape: f32[256,128], index: 3, kind: input, shape index: {}]   ;;  %s860_s4 = inlined_call_operand.<no memory space> [shape: f32[1], index: 4, kind: input, shape index: {}]   ;;  %s861_s5 = inlined_call_operand.vmem [shape: f32[128,1], index: 5, kind: output, shape index: {}]  }
   0x1   :  { %s23_s19 = sshll.u32 %s608_s18, 4  ;;  %s24_s19 = int_to_ptr.vmem [resolvable:$true] %s23_s19 }
   0x2   :  { %s594_s20 = scalar_lea.vmem %s24_s19, 4096  ;;  %p599_p1 = scmp.lt.s32.totalorder %s24_s19, %s24_s19 }
   0x3   :  { %p595_p0 = scmp.ne.s32.totalorder %s24_s19, %s594_s20  ;;  %p600_p2 = scmp.lt.s32.totalorder %s594_s20, %s594_s20 }
   0x5   :  { %p601_p3 = por %p600_p2, %p599_p1 }
   0x7   :  { %p602_p4 = pnand %p601_p3, %p595_p0 }
   0x9   :  { %605 = shalt.err (!%p602_p4)
}
   0xa   :  { %s609_s21 = smov 128   ;;  %s610_s22 = smov 8  }
   0xb   :  { %29 = dma.hbm_to_vmem [thread:$0]  %s859_s3, 4096, %s24_s19, [#allocation4], %s609_s21, %s609_s21, %s610_s22  }
   0xc   :  { %606 = dma.done.wait [#allocation4], 4096  }
   0xd   :  { %607 = vsyncadd [#allocation4], 4294963200  ;;  %v611_v0 = vmov 0   ;;  %v39_v1 = vld [vmem:[%s856_s0 + $0x8] sm:$0xff]  ;;  %v38_v2 = vld [vmem:[%s856_s0] sm:$0xff]  ;;  %v135_v49 = vlaneseq  ;;  %vm446_vm0 = vcmask 7168  }
   0xe   :  { %585 = vset.pattern.permute.xlu1 %v611_v0  ;;  %584 = vset.pattern.permute.xlu0 %v611_v0  ;;  %v47_v3 = vld [vmem:[%s856_s0 + $0x48] sm:$0xff]  ;;  %v46_v4 = vld [vmem:[%s856_s0 + $0x40] sm:$0xff]  ;;  %v283_v5 = vld [vmem:[#allocation3 + $0xf8] sm:$0xff] }
   0xf   :  { %61 = vperm.xlu1 %585, %v39_v1   ;;  %56 = vperm.xlu0 %584, %v38_v2   ;;  %v267_v6 = vld [vmem:[#allocation3 + $0x78] sm:$0xff]  ;;  %v48_v7 = vld [vmem:[%s856_s0 + $0x50] sm:$0xff]  ;;  %v281_v11 = vld [vmem:[#allocation3 + $0xe8] sm:$0xff]  ;;  %v136_v50 = vshrl.u32 %v135_v49, 7 }
  0x10   :  { %v40_v8 = vld [vmem:[%s856_s0 + $0x10] sm:$0xff]  ;;  %468 = vmatprep.subr.mxu0 %v283_v5  ;;  %548 = vmatprep.subr.mxu1 %v283_v5  ;;  %v265_v12 = vld [vmem:[#allocation3 + $0x68] sm:$0xff]  ;;  %v49_v13 = vld [vmem:[%s856_s0 + $0x58] sm:$0xff] }
  0x11   :  { %v282_v9 = vld [vmem:[#allocation3 + $0xf0] sm:$0xff]  ;;  %469 = vmatpush3.msra.mxu0 %v267_v6  ;;  %564 = vmatpush3.msra.mxu1 %v267_v6  ;;  %v41_v14 = vld [vmem:[%s856_s0 + $0x18] sm:$0xff]  ;;  %v280_v15 = vld [vmem:[#allocation3 + $0xe0] sm:$0xff]  ;;  %v137_v51 = vsub.s32 0, %v136_v50  ;;  %v141_v52 = vsub.s32 1, %v136_v50 }
  0x12   :  { %v266_v10 = vld [vmem:[#allocation3 + $0x70] sm:$0xff]  ;;  %470 = vmatprep.subr.mxu0 %v282_v9  ;;  %549 = vmatprep.subr.mxu1 %v282_v9  ;;  %v264_v16 = vld [vmem:[#allocation3 + $0x60] sm:$0xff]  ;;  %v279_v17 = vld [vmem:[#allocation3 + $0xd8] sm:$0xff] }
  0x13   :  { %101 = vperm.xlu1 %585, %v47_v3   ;;  %96 = vperm.xlu0 %584, %v46_v4   ;;  %v50_v18 = vld [vmem:[%s856_s0 + $0x60] sm:$0xff]  ;;  %v263_v20 = vld [vmem:[#allocation3 + $0x58] sm:$0xff]  ;;  %v278_v21 = vld [vmem:[#allocation3 + $0xd0] sm:$0xff] }
  0x14   :  { %471 = vmatpush3.msra.mxu0 %v266_v10  ;;  %565 = vmatpush3.msra.mxu1 %v266_v10  ;;  %v42_v19 = vld [vmem:[%s856_s0 + $0x20] sm:$0xff]  ;;  %v262_v22 = vld [vmem:[#allocation3 + $0x50] sm:$0xff]  ;;  %v51_v23 = vld [vmem:[%s856_s0 + $0x68] sm:$0xff] }
  0x15   :  { %472 = vmatprep.subr.mxu0 %v281_v11  ;;  %550 = vmatprep.subr.mxu1 %v281_v11  ;;  %v43_v24 = vld [vmem:[%s856_s0 + $0x28] sm:$0xff]  ;;  %v276_v27 = vld [vmem:[#allocation3 + $0xc0] sm:$0xff]  ;;  %v52_v28 = vld [vmem:[%s856_s0 + $0x70] sm:$0xff] }
  0x16   :  { %473 = vmatpush3.msra.mxu0 %v265_v12  ;;  %566 = vmatpush3.msra.mxu1 %v265_v12  ;;  %v277_v25 = vld [vmem:[#allocation3 + $0xc8] sm:$0xff]  ;;  %v44_v29 = vld [vmem:[%s856_s0 + $0x30] sm:$0xff]  ;;  %v260_v30 = vld [vmem:[#allocation3 + $0x40] sm:$0xff] }
  0x17   :  { %106 = vperm.xlu1 %585, %v48_v7   ;;  %66 = vperm.xlu0 %584, %v40_v8   ;;  %v261_v26 = vld [vmem:[#allocation3 + $0x48] sm:$0xff]  ;;  %v275_v31 = vld [vmem:[#allocation3 + $0xb8] sm:$0xff]  ;;  %v274_v35 = vld [vmem:[#allocation3 + $0xb0] sm:$0xff] }
  0x18   :  { %474 = vmatprep.subr.mxu0 %v280_v15  ;;  %551 = vmatprep.subr.mxu1 %v280_v15  ;;  %v259_v32 = vld [vmem:[#allocation3 + $0x38] sm:$0xff]  ;;  %v258_v36 = vld [vmem:[#allocation3 + $0x30] sm:$0xff]  ;;  %v273_v37 = vld [vmem:[#allocation3 + $0xa8] sm:$0xff] }
  0x19   :  { %475 = vmatpush3.msra.mxu0 %v264_v16  ;;  %567 = vmatpush3.msra.mxu1 %v264_v16  ;;  %v53_v33 = vld [vmem:[%s856_s0 + $0x78] sm:$0xff]  ;;  %v257_v38 = vld [vmem:[#allocation3 + $0x28] sm:$0xff]  ;;  %v272_v39 = vld [vmem:[#allocation3 + $0xa0] sm:$0xff] }
  0x1a   :  { %476 = vmatprep.subr.mxu0 %v279_v17  ;;  %552 = vmatprep.subr.mxu1 %v279_v17  ;;  %v45_v34 = vld [vmem:[%s856_s0 + $0x38] sm:$0xff]  ;;  %v256_v40 = vld [vmem:[#allocation3 + $0x20] sm:$0xff]  ;;  %v270_v43 = vld [vmem:[#allocation3 + $0x90] sm:$0xff] }
  0x1b   :  { %111 = vperm.xlu1 %585, %v49_v13   ;;  %71 = vperm.xlu0 %584, %v41_v14   ;;  %v271_v41 = vld [vmem:[#allocation3 + $0x98] sm:$0xff]  ;;  %v254_v44 = vld [vmem:[#allocation3 + $0x10] sm:$0xff]  ;;  %v269_v45 = vld [vmem:[#allocation3 + $0x88] sm:$0xff] }
  0x1c   :  { %477 = vmatpush3.msra.mxu0 %v263_v20  ;;  %568 = vmatpush3.msra.mxu1 %v263_v20  ;;  %v255_v42 = vld [vmem:[#allocation3 + $0x18] sm:$0xff]  ;;  %v253_v46 = vld [vmem:[#allocation3 + $0x8] sm:$0xff]  ;;  %v268_v47 = vld [vmem:[#allocation3 + $0x80] sm:$0xff] }
  0x1d   :  { %478 = vmatprep.subr.mxu0 %v278_v21  ;;  %553 = vmatprep.subr.mxu1 %v278_v21  ;;  %v252_v48 = vld [vmem:[#allocation3] sm:$0xff] }
  0x1e   :  { %479 = vmatpush3.msra.mxu0 %v262_v22  ;;  %569 = vmatpush3.msra.mxu1 %v262_v22  ;;  %v35_v53 = vld [vmem:[%s857_s1] sm:$0x3] }
  0x1f   :  { %116 = vperm.xlu1 %585, %v50_v18   ;;  %76 = vperm.xlu0 %584, %v42_v19   ;;  %v36_v54 = vld [vmem:[%s858_s2] sm:$0x3]  ;;  %v699_v55 = vrot.slane %v35_v53, %v137_v51  ;;  %v701_v56 = vrot.slane %v35_v53, %v141_v52 }
  0x20   :  { %480 = vmatprep.subr.mxu0 %v277_v25  ;;  %554 = vmatprep.subr.mxu1 %v277_v25  ;;  %v703_v57 = vrot.slane %v36_v54, %v137_v51  ;;  %v705_v58 = vrot.slane %v36_v54, %v141_v52 }
  0x21   :  { %481 = vmatpush3.msra.mxu0 %v261_v26  ;;  %570 = vmatpush3.msra.mxu1 %v261_v26 }
  0x22   :  { %482 = vmatprep.subr.mxu0 %v276_v27  ;;  %555 = vmatprep.subr.mxu1 %v276_v27 }
  0x23   :  { %121 = vperm.xlu1 %585, %v51_v23   ;;  %81 = vperm.xlu0 %584, %v43_v24  }
  0x24   :  { %483 = vmatpush3.msra.mxu0 %v260_v30  ;;  %571 = vmatpush3.msra.mxu1 %v260_v30 }
  0x25   :  { %484 = vmatprep.subr.mxu0 %v275_v31  ;;  %556 = vmatprep.subr.mxu1 %v275_v31 }
  0x26   :  { %485 = vmatpush3.msra.mxu0 %v259_v32  ;;  %572 = vmatpush3.msra.mxu1 %v259_v32 }
  0x27   :  { %126 = vperm.xlu1 %585, %v52_v28   ;;  %86 = vperm.xlu0 %584, %v44_v29  }
  0x28   :  { %486 = vmatprep.subr.mxu0 %v274_v35  ;;  %557 = vmatprep.subr.mxu1 %v274_v35 }
  0x29   :  { %487 = vmatpush3.msra.mxu0 %v258_v36  ;;  %573 = vmatpush3.msra.mxu1 %v258_v36 }
  0x2a   :  { %488 = vmatprep.subr.mxu0 %v273_v37  ;;  %558 = vmatprep.subr.mxu1 %v273_v37 }
  0x2b   :  { %131 = vperm.xlu1 %585, %v53_v33   ;;  %91 = vperm.xlu0 %584, %v45_v34  }
  0x2c   :  { %489 = vmatpush3.msra.mxu0 %v257_v38  ;;  %574 = vmatpush3.msra.mxu1 %v257_v38 }
  0x2d   :  { %490 = vmatprep.subr.mxu0 %v272_v39  ;;  %559 = vmatprep.subr.mxu1 %v272_v39 }
  0x2e   :  { %491 = vmatpush3.msra.mxu0 %v256_v40  ;;  %575 = vmatpush3.msra.mxu1 %v256_v40 }
  0x2f   :  { %492 = vmatprep.subr.mxu0 %v271_v41  ;;  %560 = vmatprep.subr.mxu1 %v271_v41 }
  0x30   :  { %493 = vmatpush3.msra.mxu0 %v255_v42  ;;  %576 = vmatpush3.msra.mxu1 %v255_v42 }
  0x31   :  { %494 = vmatprep.subr.mxu0 %v270_v43  ;;  %561 = vmatprep.subr.mxu1 %v270_v43 }
  0x32   :  { %495 = vmatpush3.msra.mxu0 %v254_v44  ;;  %577 = vmatpush3.msra.mxu1 %v254_v44 }
  0x33   :  { %496 = vmatprep.subr.mxu0 %v269_v45  ;;  %562 = vmatprep.subr.mxu1 %v269_v45 }
  0x34   :  { %497 = vmatpush3.msra.mxu0 %v253_v46  ;;  %578 = vmatpush3.msra.mxu1 %v253_v46 }
  0x35   :  { %498 = vmatprep.subr.mxu0 %v268_v47  ;;  %563 = vmatprep.subr.mxu1 %v268_v47 }
  0x36   :  { %499 = vmatpush3.msra.mxu0 %v252_v48  ;;  %579 = vmatpush3.msra.mxu1 %v252_v48 }
  0x8a   :  { %v62_v59 = vpop.permute.xlu1 %61  ;;  %v57_v60 = vpop.permute.xlu0 %56 }
  0x8b   :  { %v147_v61 = vmul.f32 %v699_v55, %v62_v59  ;;  %v148_v62 = vmul.f32 %v701_v56, %v62_v59  ;;  %v145_v63 = vmul.f32 %v699_v55, %v57_v60  ;;  %v146_v0 = vmul.f32 %v701_v56, %v57_v60 }
  0x8d   :  { %v191_v1 = vadd.f32 %v705_v58, %v148_v62  ;;  %v188_v2 = vadd.f32 %v703_v57, %v145_v63  ;;  %v189_v3 = vadd.f32 %v705_v58, %v146_v0  ;;  %v190_v6 = vadd.f32 %v703_v57, %v147_v61 }
  0x8e   :  { %v102_v4 = vpop.permute.xlu1 %101  ;;  %v97_v5 = vpop.permute.xlu0 %96 }
  0x8f   :  { %v164_v7 = vmul.f32 %v701_v56, %v102_v4  ;;  %v161_v8 = vmul.f32 %v699_v55, %v97_v5  ;;  %v162_v9 = vmul.f32 %v701_v56, %v97_v5  ;;  %v221_v10 = vmax.f32 %v189_v3, 0.0 }
  0x90   :  { %v220_v11 = vmax.f32 %v188_v2, 0.0  ;;  %v223_v12 = vmax.f32 %v191_v1, 0.0  ;;  %v163_v15 = vmul.f32 %v699_v55, %v102_v4  ;;  %v222_v22 = vmax.f32 %v190_v6, 0.0 }
  0x91   :  { %v204_v13 = vadd.f32 %v703_v57, %v161_v8  ;;  %v205_v14 = vadd.f32 %v705_v58, %v162_v9  ;;  %v207_v16 = vadd.f32 %v705_v58, %v164_v7  ;;  %348 = vmatprep.mubr.f32.mxu0 %v221_v10 }
  0x92   :  { %v107_v17 = vpop.permute.xlu1 %106  ;;  %v67_v18 = vpop.permute.xlu0 %66  ;;  %349 = vmatmul.mubr.f32.vlgmr.msra.gmra.mxu0 %v220_v11  ;;  %v206_v27 = vadd.f32 %v703_v57, %v163_v15 }
  0x93   :  { %v166_v19 = vmul.f32 %v701_v56, %v107_v17  ;;  %v149_v20 = vmul.f32 %v699_v55, %v67_v18  ;;  %v150_v21 = vmul.f32 %v701_v56, %v67_v18  ;;  %353 = vmatprep.mubr.f32.mxu0 %v223_v12  ;;  %v237_v23 = vmax.f32 %v205_v14, 0.0 }
  0x94   :  { %v236_v24 = vmax.f32 %v204_v13, 0.0  ;;  %v165_v28 = vmul.f32 %v699_v55, %v107_v17  ;;  %v239_v31 = vmax.f32 %v207_v16, 0.0  ;;  %v238_v45 = vmax.f32 %v206_v27, 0.0 }
  0x95   :  { %v192_v25 = vadd.f32 %v703_v57, %v149_v20  ;;  %v193_v26 = vadd.f32 %v705_v58, %v150_v21  ;;  %388 = vmatprep.mubr.f32.mxu1 %v237_v23  ;;  %v209_v32 = vadd.f32 %v705_v58, %v166_v19 }
  0x96   :  { %v112_v29 = vpop.permute.xlu1 %111  ;;  %v72_v30 = vpop.permute.xlu0 %71  ;;  %354 = vmatmul.mubr.f32.gmra.mxu0 %v222_v22  ;;  %389 = vmatmul.mubr.f32.vlgmr.msra.gmra.mxu1 %v236_v24  ;;  %v208_v40 = vadd.f32 %v703_v57, %v165_v28 }
  0x97   :  { %v168_v33 = vmul.f32 %v701_v56, %v112_v29  ;;  %v151_v34 = vmul.f32 %v699_v55, %v72_v30  ;;  %v152_v35 = vmul.f32 %v701_v56, %v72_v30  ;;  %v225_v36 = vmax.f32 %v193_v26, 0.0  ;;  %393 = vmatprep.mubr.f32.mxu1 %v239_v31 }
  0x98   :  { %v224_v37 = vmax.f32 %v192_v25, 0.0  ;;  %v167_v41 = vmul.f32 %v699_v55, %v112_v29  ;;  %v241_v49 = vmax.f32 %v209_v32, 0.0  ;;  %v240_v62 = vmax.f32 %v208_v40, 0.0 }
  0x99   :  { %v194_v38 = vadd.f32 %v703_v57, %v151_v34  ;;  %v195_v39 = vadd.f32 %v705_v58, %v152_v35  ;;  %v211_v42 = vadd.f32 %v705_v58, %v168_v33  ;;  %358 = vmatprep.mubr.f32.mxu0 %v225_v36 }
  0x9a   :  { %v117_v43 = vpop.permute.xlu1 %116  ;;  %v77_v44 = vpop.permute.xlu0 %76  ;;  %359 = vmatmul.mubr.f32.gmra.mxu0 %v224_v37  ;;  %394 = vmatmul.mubr.f32.gmra.mxu1 %v238_v45  ;;  %v210_v54 = vadd.f32 %v703_v57, %v167_v41 }
  0x9b   :  { %v170_v46 = vmul.f32 %v701_v56, %v117_v43  ;;  %v153_v47 = vmul.f32 %v699_v55, %v77_v44  ;;  %v154_v48 = vmul.f32 %v701_v56, %v77_v44  ;;  %v227_v50 = vmax.f32 %v195_v39, 0.0  ;;  %398 = vmatprep.mubr.f32.mxu1 %v241_v49 }
  0x9c   :  { %v226_v51 = vmax.f32 %v194_v38, 0.0  ;;  %v169_v59 = vmul.f32 %v699_v55, %v117_v43  ;;  %v243_v63 = vmax.f32 %v211_v42, 0.0  ;;  %v242_v13 = vmax.f32 %v210_v54, 0.0 }
  0x9d   :  { %v196_v52 = vadd.f32 %v703_v57, %v153_v47  ;;  %v197_v53 = vadd.f32 %v705_v58, %v154_v48  ;;  %363 = vmatprep.mubr.f32.mxu0 %v227_v50  ;;  %v213_v0 = vadd.f32 %v705_v58, %v170_v46 }
  0x9e   :  { %v122_v60 = vpop.permute.xlu1 %121  ;;  %v82_v61 = vpop.permute.xlu0 %81  ;;  %364 = vmatmul.mubr.f32.gmra.mxu0 %v226_v51  ;;  %399 = vmatmul.mubr.f32.gmra.mxu1 %v240_v62  ;;  %v212_v8 = vadd.f32 %v703_v57, %v169_v59 }
  0x9f   :  { %v172_v1 = vmul.f32 %v701_v56, %v122_v60  ;;  %v155_v2 = vmul.f32 %v699_v55, %v82_v61  ;;  %v156_v3 = vmul.f32 %v701_v56, %v82_v61  ;;  %v229_v4 = vmax.f32 %v197_v53, 0.0  ;;  %403 = vmatprep.mubr.f32.mxu1 %v243_v63 }
  0xa0   :  { %v228_v5 = vmax.f32 %v196_v52, 0.0  ;;  %v171_v9 = vmul.f32 %v699_v55, %v122_v60  ;;  %v245_v17 = vmax.f32 %v213_v0, 0.0  ;;  %v244_v26 = vmax.f32 %v212_v8, 0.0 }
  0xa1   :  { %v198_v6 = vadd.f32 %v703_v57, %v155_v2  ;;  %v199_v7 = vadd.f32 %v705_v58, %v156_v3  ;;  %v215_v10 = vadd.f32 %v705_v58, %v172_v1  ;;  %368 = vmatprep.mubr.f32.mxu0 %v229_v4 }
  0xa2   :  { %v127_v11 = vpop.permute.xlu1 %126  ;;  %v87_v12 = vpop.permute.xlu0 %86  ;;  %369 = vmatmul.mubr.f32.gmra.mxu0 %v228_v5  ;;  %404 = vmatmul.mubr.f32.gmra.mxu1 %v242_v13  ;;  %v214_v22 = vadd.f32 %v703_v57, %v171_v9 }
  0xa3   :  { %v174_v14 = vmul.f32 %v701_v56, %v127_v11  ;;  %v157_v15 = vmul.f32 %v699_v55, %v87_v12  ;;  %v158_v16 = vmul.f32 %v701_v56, %v87_v12  ;;  %v231_v18 = vmax.f32 %v199_v7, 0.0  ;;  %408 = vmatprep.mubr.f32.mxu1 %v245_v17 }
  0xa4   :  { %v230_v19 = vmax.f32 %v198_v6, 0.0  ;;  %v173_v23 = vmul.f32 %v699_v55, %v127_v11  ;;  %v247_v27 = vmax.f32 %v215_v10, 0.0  ;;  %v246_v38 = vmax.f32 %v214_v22, 0.0 }
  0xa5   :  { %v200_v20 = vadd.f32 %v703_v57, %v157_v15  ;;  %v201_v21 = vadd.f32 %v705_v58, %v158_v16  ;;  %373 = vmatprep.mubr.f32.mxu0 %v231_v18  ;;  %v217_v28 = vadd.f32 %v705_v58, %v174_v14 }
  0xa6   :  { %v132_v24 = vpop.permute.xlu1 %131  ;;  %v92_v25 = vpop.permute.xlu0 %91  ;;  %374 = vmatmul.mubr.f32.gmra.mxu0 %v230_v19  ;;  %409 = vmatmul.mubr.f32.gmra.mxu1 %v244_v26  ;;  %v216_v36 = vadd.f32 %v703_v57, %v173_v23 }
  0xa7   :  { %v176_v29 = vmul.f32 %v701_v56, %v132_v24  ;;  %v159_v30 = vmul.f32 %v699_v55, %v92_v25  ;;  %v160_v31 = vmul.f32 %v701_v56, %v92_v25  ;;  %v233_v32 = vmax.f32 %v201_v21, 0.0  ;;  %413 = vmatprep.mubr.f32.mxu1 %v247_v27 }
  0xa8   :  { %v232_v33 = vmax.f32 %v200_v20, 0.0  ;;  %v175_v37 = vmul.f32 %v699_v55, %v132_v24  ;;  %v249_v56 = vmax.f32 %v217_v28, 0.0  ;;  %v248_v43 = vmax.f32 %v216_v36, 0.0 }
  0xa9   :  { %v202_v34 = vadd.f32 %v703_v57, %v159_v30  ;;  %v203_v35 = vadd.f32 %v705_v58, %v160_v31  ;;  %378 = vmatprep.mubr.f32.mxu0 %v233_v32  ;;  %v219_v39 = vadd.f32 %v705_v58, %v176_v29  ;;  %v774_v58 = vstv %s860_s4 }
  0xaa   :  { %379 = vmatmul.mubr.f32.gmra.mxu0 %v232_v33  ;;  %414 = vmatmul.mubr.f32.gmra.mxu1 %v246_v38  ;;  %v218_v42 = vadd.f32 %v703_v57, %v175_v37 }
  0xab   :  { %v234_v40 = vmax.f32 %v202_v34, 0.0  ;;  %v235_v41 = vmax.f32 %v203_v35, 0.0  ;;  %418 = vmatprep.mubr.f32.mxu1 %v249_v56  ;;  %v251_v44 = vmax.f32 %v219_v39, 0.0 }
  0xac   :  { %v250_v45 = vmax.f32 %v218_v42, 0.0 }
  0xad   :  { %383 = vmatprep.mubr.f32.mxu0 %v235_v41 }
  0xae   :  { %384 = vmatmul.mubr.f32.gmra.mxu0 %v234_v40  ;;  %419 = vmatmul.mubr.f32.gmra.mxu1 %v248_v43 }
  0xaf   :  { %423 = vmatprep.mubr.f32.mxu1 %v251_v44 }
  0xb2   :  { %424 = vmatmul.mubr.f32.gmra.mxu1 %v250_v45 }
 0x152   :  { %v500_v55 = vpop.f32.mrf.mxu0 }
 0x154   :  { %v501_v46 = vpop.f32.mrf.mxu0 }
 0x155   :  { %v502_v47 = vadd.f32 %v501_v46, %v500_v55 }
 0x156   :  { %v503_v48 = vpop.f32.mrf.mxu0  ;;  %v524_v57 = vpop.f32.mrf.mxu1 }
 0x157   :  { %v430_v49 = vadd.f32 %v502_v47, %v774_v58 }
 0x158   :  { %v504_v50 = vpop.f32.mrf.mxu0  ;;  %v525_v52 = vpop.f32.mrf.mxu1 }
 0x159   :  { %447 = vst.msk [vmem:[%s861_s5] sm:$0xff] %vm446_vm0, %v430_v49  ;;  %v505_v51 = vadd.f32 %v504_v50, %v503_v48  ;;  %v526_v53 = vadd.f32 %v525_v52, %v524_v57 }
 0x15a   :  { %v506_v54 = vpop.f32.mrf.mxu0  ;;  %v527_v60 = vpop.f32.mrf.mxu1 }
 0x15b   :  { %v431_v59 = vadd.f32 %v505_v51, %v774_v58  ;;  %v438_v61 = vadd.f32 %v526_v53, %v774_v58 }
 0x15c   :  { %v507_v62 = vpop.f32.mrf.mxu0  ;;  %v528_v0 = vpop.f32.mrf.mxu1 }
 0x15d   :  { %448 = vst.msk [vmem:[%s861_s5 + $0x8] sm:$0xff] %vm446_vm0, %v431_v59  ;;  %v508_v63 = vadd.f32 %v507_v62, %v506_v54  ;;  %455 = vst.msk [vmem:[%s861_s5 + $0x40] sm:$0xff] %vm446_vm0, %v438_v61  ;;  %v529_v1 = vadd.f32 %v528_v0, %v527_v60 }
 0x15e   :  { %v509_v2 = vpop.f32.mrf.mxu0  ;;  %v530_v4 = vpop.f32.mrf.mxu1 }
 0x15f   :  { %v432_v3 = vadd.f32 %v508_v63, %v774_v58  ;;  %v439_v5 = vadd.f32 %v529_v1, %v774_v58 }
 0x160   :  { %v510_v6 = vpop.f32.mrf.mxu0  ;;  %v531_v8 = vpop.f32.mrf.mxu1 }
 0x161   :  { %449 = vst.msk [vmem:[%s861_s5 + $0x10] sm:$0xff] %vm446_vm0, %v432_v3  ;;  %v511_v7 = vadd.f32 %v510_v6, %v509_v2  ;;  %456 = vst.msk [vmem:[%s861_s5 + $0x48] sm:$0xff] %vm446_vm0, %v439_v5  ;;  %v532_v9 = vadd.f32 %v531_v8, %v530_v4 }
 0x162   :  { %v512_v10 = vpop.f32.mrf.mxu0  ;;  %v533_v12 = vpop.f32.mrf.mxu1 }
 0x163   :  { %v433_v11 = vadd.f32 %v511_v7, %v774_v58  ;;  %v440_v13 = vadd.f32 %v532_v9, %v774_v58 }
 0x164   :  { %v513_v14 = vpop.f32.mrf.mxu0  ;;  %v534_v16 = vpop.f32.mrf.mxu1 }
 0x165   :  { %450 = vst.msk [vmem:[%s861_s5 + $0x18] sm:$0xff] %vm446_vm0, %v433_v11  ;;  %v514_v15 = vadd.f32 %v513_v14, %v512_v10  ;;  %457 = vst.msk [vmem:[%s861_s5 + $0x50] sm:$0xff] %vm446_vm0, %v440_v13  ;;  %v535_v17 = vadd.f32 %v534_v16, %v533_v12 }
 0x166   :  { %v515_v18 = vpop.f32.mrf.mxu0  ;;  %v536_v20 = vpop.f32.mrf.mxu1 }
 0x167   :  { %v434_v19 = vadd.f32 %v514_v15, %v774_v58  ;;  %v441_v21 = vadd.f32 %v535_v17, %v774_v58 }
 0x168   :  { %v516_v22 = vpop.f32.mrf.mxu0  ;;  %v537_v24 = vpop.f32.mrf.mxu1 }
 0x169   :  { %451 = vst.msk [vmem:[%s861_s5 + $0x20] sm:$0xff] %vm446_vm0, %v434_v19  ;;  %v517_v23 = vadd.f32 %v516_v22, %v515_v18  ;;  %458 = vst.msk [vmem:[%s861_s5 + $0x58] sm:$0xff] %vm446_vm0, %v441_v21  ;;  %v538_v25 = vadd.f32 %v537_v24, %v536_v20 }
 0x16a   :  { %v518_v26 = vpop.f32.mrf.mxu0  ;;  %v539_v28 = vpop.f32.mrf.mxu1 }
 0x16b   :  { %v435_v27 = vadd.f32 %v517_v23, %v774_v58  ;;  %v442_v29 = vadd.f32 %v538_v25, %v774_v58 }
 0x16c   :  { %v519_v30 = vpop.f32.mrf.mxu0  ;;  %v540_v32 = vpop.f32.mrf.mxu1 }
 0x16d   :  { %452 = vst.msk [vmem:[%s861_s5 + $0x28] sm:$0xff] %vm446_vm0, %v435_v27  ;;  %v520_v31 = vadd.f32 %v519_v30, %v518_v26  ;;  %459 = vst.msk [vmem:[%s861_s5 + $0x60] sm:$0xff] %vm446_vm0, %v442_v29  ;;  %v541_v33 = vadd.f32 %v540_v32, %v539_v28 }
 0x16e   :  { %v521_v34 = vpop.f32.mrf.mxu0  ;;  %v542_v36 = vpop.f32.mrf.mxu1 }
 0x16f   :  { %v436_v35 = vadd.f32 %v520_v31, %v774_v58  ;;  %v443_v37 = vadd.f32 %v541_v33, %v774_v58 }
 0x170   :  { %v522_v38 = vpop.f32.mrf.mxu0  ;;  %v543_v40 = vpop.f32.mrf.mxu1 }
 0x171   :  { %453 = vst.msk [vmem:[%s861_s5 + $0x30] sm:$0xff] %vm446_vm0, %v436_v35  ;;  %v523_v39 = vadd.f32 %v522_v38, %v521_v34  ;;  %460 = vst.msk [vmem:[%s861_s5 + $0x68] sm:$0xff] %vm446_vm0, %v443_v37  ;;  %v544_v41 = vadd.f32 %v543_v40, %v542_v36 }
 0x172   :  { %v545_v42 = vpop.f32.mrf.mxu1 }
 0x173   :  { %v437_v56 = vadd.f32 %v523_v39, %v774_v58  ;;  %v444_v43 = vadd.f32 %v544_v41, %v774_v58 }
 0x174   :  { %v546_v44 = vpop.f32.mrf.mxu1 }
 0x175   :  { %454 = vst.msk [vmem:[%s861_s5 + $0x38] sm:$0xff] %vm446_vm0, %v437_v56  ;;  %461 = vst.msk [vmem:[%s861_s5 + $0x70] sm:$0xff] %vm446_vm0, %v444_v43  ;;  %v547_v45 = vadd.f32 %v546_v44, %v545_v42 }
 0x177   :  { %v445_v55 = vadd.f32 %v547_v45, %v774_v58 }
 0x179   :  { %462 = vst.msk [vmem:[%s861_s5 + $0x78] sm:$0xff] %vm446_vm0, %v445_v55 }
 0x17a   :  { %467 = vsyncpa [#allocation4], 1 }

</bundles_post_ra>
